<compile_context>
chip_gen: v5e
topology: v5e:2x2
jax: 0.10.0
libtpu: 0.0.40
codegen_flags: <defaults>
</compile_context>

<pallas_src>
import jax
import jax.numpy as jnp
from jax.experimental import pallas as pl
from jax.experimental.pallas import tpu as pltpu

_N_PAD = 128        # lane-dense padded output width (true output width is 2)
_MAX_TILE_B = 2048  # beyond this, per-step grid overhead is already amortized


def _itm_heads_kernel(x_ref, w_ref, b_ref, o_ref):
    # x_ref: [tile_b, H]    activations (VMEM)
    # w_ref: [H, 128]       W^T zero-padded on the lane axis (VMEM, single-buffered)
    # b_ref: [1, 128]       f32 bias row zero-padded on the lane axis (VMEM, single-buffered)
    # o_ref: [tile_b, 128]  lane-dense padded output (VMEM)
    acc = jnp.dot(x_ref[...], w_ref[...], preferred_element_type=jnp.float32)
    o_ref[...] = (acc + b_ref[...]).astype(o_ref.dtype)


def _vmem_capacity_bytes() -> int:
    """Generation-aware VMEM capacity (falls back to the smallest, v7x 64 MiB)."""
    try:
        info = pltpu.get_tpu_info()
        cap = getattr(info, "vmem_capacity_bytes", None)
        if cap:
            return int(cap)
    except Exception:
        pass
    return 64 * 1024 * 1024


def _choose_batch_tile(batch: int, hidden: int, itemsize: int,
                       vmem_capacity: int) -> int:
    """Largest sublane-aligned batch tile whose double-buffered footprint fits
    comfortably inside this generation's VMEM, with >=2 grid steps for large B
    so megacore (v7x: 2 TensorCores) can shard the parallel batch axis."""
    budget = min(int(vmem_capacity * 0.45), 96 * 1024 * 1024)
    weight_bytes = hidden * _N_PAD * itemsize            # single-buffered resident weight
    bias_bytes = _N_PAD * 4                              # resident f32 bias row
    per_row = 2 * hidden * itemsize + 2 * _N_PAD * itemsize  # x + padded out, double-buffered
    avail = max(budget - weight_bytes - bias_bytes, 8 * per_row)
    tile = min(_MAX_TILE_B, max(8, avail // per_row))
    tile = max(8, (tile // 8) * 8)
    if batch > 64:
        half = -(-batch // 2)          # cdiv(B, 2)
        half = -(-half // 8) * 8       # round up to sublane multiple
        tile = min(tile, half)         # guarantee >= 2 grid steps
    if batch <= tile:
        return batch                   # single full-extent block (exempt from (8,128) rule)
    return tile


@jax.jit
def itm_heads_pallas(pooled_output: jax.Array,
                     weight: jax.Array,
                     bias: jax.Array) -> jax.Array:
    """pooled_output: [B, H]; weight: [2, H] (PyTorch nn.Linear layout); bias: [2] -> [B, 2]."""
    B, H = pooled_output.shape
    n_cls = weight.shape[0]            # == 2
    out_dtype = pooled_output.dtype
    itemsize = jnp.dtype(out_dtype).itemsize

    # One-time layout plumbing (cacheable / constant-foldable in a real model):
    # lane-dense [H, 128] padded W^T and lane-dense [1, 128] f32 bias row.
    w_pad = jnp.pad(weight.astype(out_dtype).T, ((0, 0), (0, _N_PAD - n_cls)))
    b_pad = jnp.pad(bias.astype(jnp.float32), (0, _N_PAD - n_cls)).reshape(1, _N_PAD)

    vmem_cap = _vmem_capacity_bytes()
    tile_b = _choose_batch_tile(B, H, itemsize, vmem_cap)
    grid = (pl.cdiv(B, tile_b),)

    # Explicit scoped-VMEM limit: real footprint plus headroom, so larger tiles
    # never trip the generation-dependent default limit (and never OOM v7x).
    footprint = (2 * tile_b * H * itemsize           # x, double-buffered
                 + 2 * tile_b * _N_PAD * itemsize    # padded out, double-buffered
                 + H * _N_PAD * itemsize             # weight, single-buffered
                 + _N_PAD * 4)                       # bias row
    vmem_limit = int(min(max(footprint * 3 // 2 + (2 << 20), 8 << 20),
                         vmem_cap * 9 // 10))

    cost = pl.CostEstimate(
        # flops = useful FLOPs (scheduler hint only; MXU actually issues 128-wide).
        flops=2 * B * H * n_cls,
        transcendentals=0,
        bytes_accessed=(B * H * itemsize             # pooled_output read
                        + H * _N_PAD * itemsize      # padded weight read
                        + _N_PAD * 4                 # bias row read
                        + B * _N_PAD * itemsize),    # padded output write
    )

    out_padded = pl.pallas_call(
        _itm_heads_kernel,
        out_shape=jax.ShapeDtypeStruct((B, _N_PAD), out_dtype),
        grid=grid,
        in_specs=[
            pl.BlockSpec((tile_b, H), lambda i: (i, 0)),          # batch-tiled activations
            pl.BlockSpec((H, _N_PAD), lambda i: (0, 0),
                         pipeline_mode=pl.Buffered(1)),           # constant weight: single-buffer
            pl.BlockSpec((1, _N_PAD), lambda i: (0, 0),
                         pipeline_mode=pl.Buffered(1)),           # constant bias row: single-buffer
        ],
        out_specs=pl.BlockSpec((tile_b, _N_PAD), lambda i: (i, 0)),
        compiler_params=pltpu.CompilerParams(
            dimension_semantics=("parallel",),
            vmem_limit_bytes=vmem_limit),
        cost_estimate=cost,
    )(pooled_output, w_pad, b_pad)

    # True output is the first n_cls columns. The slice lives inside this jit so
    # XLA fuses it; callers wanting zero extra HBM traffic can consume the
    # padded [B, 128] result directly and slice at the point of use.
    return out_padded[:, :n_cls]


@jax.jit
def _itm_heads_xla(pooled_output, weight, bias):
    return (pooled_output @ weight.T + bias).astype(pooled_output.dtype)


def itm_heads_forward(pooled_output: jax.Array,
                      weight: jax.Array,
                      bias: jax.Array,
                      *, min_pallas_batch: int = 16) -> jax.Array:
    """ItmHeads.forward. Tiny batches use a fused XLA dot (pallas_call padding,
    grid setup and slicing are pure overhead at that size)."""
    if pooled_output.shape[0] < min_pallas_batch:
        return _itm_heads_xla(pooled_output, weight, bias)
    return itm_heads_pallas(pooled_output, weight, bias)


if __name__ == "__main__":
    batch = 2
    hidden = 32  # config.hidden_size

    key = jax.random.PRNGKey(0)
    k_x, k_w, k_b = jax.random.split(key, 3)

    pooled_output = jax.random.normal(k_x, (batch, hidden), dtype=jnp.float32)
    # Deterministic synthetic parameters for nn.Linear(hidden_size, 2):
    weight = jax.random.normal(k_w, (2, hidden), dtype=jnp.float32) * 0.02
    bias = jax.random.normal(k_b, (2,), dtype=jnp.float32) * 0.02

    # Exercise the Pallas kernel directly at the module's small test shape.
    out = jax.block_until_ready(itm_heads_pallas(pooled_output, weight, bias))
    ref = pooled_output @ weight.T + bias
    assert out.shape == (batch, 2)
    assert jnp.allclose(out, ref, atol=1e-5, rtol=1e-5), "pallas mismatch (B=2)"

    # Also exercise the multi-step grid path (2 parallel blocks, partial last block).
    big_b = 100
    pooled_big = jax.random.normal(jax.random.fold_in(k_x, 1), (big_b, hidden),
                                   dtype=jnp.float32)
    out_big = jax.block_until_ready(itm_heads_pallas(pooled_big, weight, bias))
    ref_big = pooled_big @ weight.T + bias
    assert out_big.shape == (big_b, 2)
    assert jnp.allclose(out_big, ref_big, atol=1e-5, rtol=1e-5), "pallas mismatch (B=100)"

    # Dispatcher sanity check (tiny-batch XLA fast path).
    out_disp = jax.block_until_ready(itm_heads_forward(pooled_output, weight, bias))
    assert jnp.allclose(out_disp, ref, atol=1e-5, rtol=1e-5), "dispatch mismatch"

    print("KERNEL_OK")
</pallas_src>

<mosaic_0001>
module attributes {stable_mosaic.version = 11 : i64} {
  func.func @_itm_heads_kernel(%arg0: i32, %arg1: memref<2x32xf32, #tpu.memory_space<vmem>>, %arg2: memref<32x128xf32, #tpu.memory_space<vmem>>, %arg3: memref<1x128xf32, #tpu.memory_space<vmem>>, %arg4: memref<2x128xf32, #tpu.memory_space<vmem>>) attributes {dimension_semantics = [#tpu.dimension_semantics<parallel>], iteration_bounds = array<i64: 1>, scalar_prefetch = 0 : i64, scratch_operands = 0 : i64, tpu.core_type = #tpu.core_type<tc>, window_params = [{transform_indices = @transform_0, window_bounds = array<i64: 2, 32>}, {pipeline_mode = #tpu.pipeline_mode<synchronous>, transform_indices = @transform_1, window_bounds = array<i64: 32, 128>}, {pipeline_mode = #tpu.pipeline_mode<synchronous>, transform_indices = @transform_2, window_bounds = array<i64: 1, 128>}, {transform_indices = @transform_3, window_bounds = array<i64: 2, 128>}]} {
    %c0 = arith.constant 0 : index
    %c0_0 = arith.constant 0 : index
    %0 = vector.load %arg1[%c0, %c0_0] : memref<2x32xf32, #tpu.memory_space<vmem>>, vector<2x32xf32>
    %c0_1 = arith.constant 0 : index
    %c0_2 = arith.constant 0 : index
    %1 = vector.load %arg2[%c0_1, %c0_2] : memref<32x128xf32, #tpu.memory_space<vmem>>, vector<32x128xf32>
    %cst = arith.constant dense<0.000000e+00> : vector<2x128xf32>
    %2 = tpu.matmul %0, %1, %cst {dimension_numbers = #tpu.dot_dimension_numbers<[1], [0], [0], [1], [0, 0, 1, 1], [], []>} : vector<2x32xf32>, vector<32x128xf32>, vector<2x128xf32> -> vector<2x128xf32>
    %c0_3 = arith.constant 0 : index
    %c0_4 = arith.constant 0 : index
    %3 = vector.load %arg3[%c0_3, %c0_4] : memref<1x128xf32, #tpu.memory_space<vmem>>, vector<1x128xf32>
    %4 = vector.broadcast %3 : vector<1x128xf32> to vector<2x128xf32>
    %5 = arith.addf %2, %4 : vector<2x128xf32>
    %c0_5 = arith.constant 0 : index
    %c0_6 = arith.constant 0 : index
    %6 = vector.load %arg4[%c0_5, %c0_6] : memref<2x128xf32, #tpu.memory_space<vmem>>, vector<2x128xf32>
    tpu.vector_store %arg4[%c0_5, %c0_6], %5 {strides = array<i32>} : memref<2x128xf32, #tpu.memory_space<vmem>>, vector<2x128xf32>,
    return
  }
  func.func @transform_0(%arg0: i32) -> (i32, i32) {
    %c0_i32 = arith.constant 0 : i32
    %c0_i32_0 = arith.constant 0 : i32
    return %arg0, %c0_i32 : i32, i32
  }
  func.func @transform_1(%arg0: i32) -> (i32, i32) {
    %c0_i32 = arith.constant 0 : i32
    %c0_i32_0 = arith.constant 0 : i32
    %c0_i32_1 = arith.constant 0 : i32
    return %c0_i32, %c0_i32_0 : i32, i32
  }
  func.func @transform_2(%arg0: i32) -> (i32, i32) {
    %c0_i32 = arith.constant 0 : i32
    %c0_i32_0 = arith.constant 0 : i32
    %c0_i32_1 = arith.constant 0 : i32
    return %c0_i32, %c0_i32_0 : i32, i32
  }
  func.func @transform_3(%arg0: i32) -> (i32, i32) {
    %c0_i32 = arith.constant 0 : i32
    %c0_i32_0 = arith.constant 0 : i32
    return %arg0, %c0_i32 : i32, i32
  }
}

</mosaic_0001>

<bundles_post_ra>
// kernel: itm_heads_pallas.1
= control target key start
LH: loop header
LB: loop body
LE: loop exit
PB: predicated region body
PF: predicated region fallthrough
CT: control target
= control target key end

     0   :  { %s136_s0 = inlined_call_operand.vmem [shape: f32[2,32], index: 0, kind: input, shape index: {}]   ;;  %s137_s1 = inlined_call_operand.vmem [shape: f32[32,128], index: 1, kind: input, shape index: {}]   ;;  %s138_s2 = inlined_call_operand.vmem [shape: f32[1,128], index: 2, kind: input, shape index: {}]   ;;  %s139_s3 = inlined_call_operand.hbm [shape: f32[2,128], index: 3, kind: output, shape index: {}]  }
   0x1   :  { %v19_v0 = vld [vmem:[%s137_s1 + $0x18] sm:$0xff]  ;;  %v18_v1 = vld [vmem:[%s137_s1 + $0x10] sm:$0xff]  ;;  %v17_v2 = vld [vmem:[%s137_s1 + $0x8] sm:$0xff] }
   0x2   :  { %40 = vmatpush.msra.mxu0 %v19_v0 }
   0x3   :  { %8 = vsyncpa [#allocation3], 0  ;;  %v16_v3 = vld [vmem:[%s137_s1] sm:$0xff]  ;;  %vm24_vm0 = vcmask 261120   ;;  %s94_s24 = smov [#allocation2]   ;;  %s56_s28 = sshll.u32 %s139_s3, 4  ;;  %s57_s28 = int_to_ptr.hbm [resolvable:$true] %s56_s28 }
   0x4   :  { %41 = vmatpush.msra.mxu0 %v18_v1  ;;  %v15_v4 = vld [vmem:[%s136_s0] sm:$0x3]  ;;  %s54_s25 = sshll.u32 %s94_s24, 4  ;;  %s55_s25 = int_to_ptr.vmem [resolvable:$true] %s54_s25 }
   0x5   :  { %v67_v5 = vld [vmem:[%s138_s2] ss:$0 sm:$0xff] }
   0x6   :  { %42 = vmatpush.msra.mxu0 %v17_v2 }
   0x8   :  { %43 = vmatpush.msra.mxu0 %v16_v3 }
   0x9   :  { %65 = vmatmul.msk.f32.vlgmr.msra.gmra.mxu0 %vm24_vm0, %v15_v4 }
  0x86   :  { %v45_v6 = vpop.f32.mrf.mxu0 }
  0x87   :  { %v46_v7 = vadd.f32 %v67_v5, %v45_v6 }
  0x89   :  { %48 = vst [vmem:[#allocation2] sm:$0x3] %v46_v7 }
  0x8a   :  { %59 = dma.vmem_to_hbm [thread:$0]  %s55_s25, 32, %s57_s28, [#allocation3]  }
  0x8b   :  { %92 = dma.done.wait [#allocation3], 32  }
  0x8c   :  { %93 = vsyncadd [#allocation3], 4294967264 }
  0x8d   :  { %64 = vsyncpa [#allocation3], 1 }

</bundles_post_ra>
